<compile_context>
chip_gen: v7x
topology: tpu7x:2x2x1
jax: 0.10.0
libtpu: 0.0.40
codegen_flags: <defaults>
</compile_context>

<pallas_src>
import math
from functools import partial

import numpy as np
import jax
import jax.numpy as jnp
from jax.experimental import pallas as pl
from jax.experimental.pallas import tpu as pltpu


# ----------------------------------------------------------------------------
# Tiling helpers (generation-agnostic, conservative caps that fit v7x VMEM too)
# ----------------------------------------------------------------------------
def _choose_row_tile(length, cap=256):
    """Largest multiple-of-8 divisor of `length` <= cap (full length if small
    or no such divisor exists, e.g. prime lengths)."""
    if length <= cap:
        return length
    for t in range(cap - (cap % 8), 7, -8):
        if length % t == 0:
            return t
    return length


def _choose_chan_tile(chan, cap=512):
    """Largest multiple-of-128 divisor of `chan` <= cap (full width if small)."""
    if chan <= cap:
        return chan
    for t in range(cap - (cap % 128), 127, -128):
        if chan % t == 0:
            return t
    return chan


# ----------------------------------------------------------------------------
# Kernel 1: row-tiled MXU Gram matmul with the head/channel mean fused in.
#   out[b, c] = sum_{t, he} q[b, t, he] * k[b, (t + c) % L, he]
# (the wrapper maps column c -> delay tau = (-c) mod L and divides by H*E,
#  which reproduces mean(mean(irfft(rfft(q)*conj(rfft(k))), dim=1), dim=1)).
# ----------------------------------------------------------------------------
def _corr_mean_kernel(q_ref, k_ref, out_ref, *, length, tile_rows,
                      num_row_tiles, use_xlu_roll):
    r = pl.program_id(1)

    # MXU: G[t, s] = sum_he q[base + t, he] * k[s, he]  (bf16 in, f32 acc)
    g = jax.lax.dot_general(
        q_ref[...], k_ref[...],
        dimension_numbers=(((1,), (1,)), ((), ())),
        preferred_element_type=jnp.float32)              # [tile_rows, length]

    def roll_cols(x, shift):
        if use_xlu_roll:
            return pltpu.roll(x, shift, axis=1)          # XLU lane rotation
        return jnp.roll(x, shift, axis=1)                # slice+concat fallback

    # Roll row t left by its LOCAL index t (bit decomposition -> only
    # log2(tile_rows) roll+select passes), so column c holds G[t, (c+t) % L].
    row = jax.lax.broadcasted_iota(jnp.int32, (tile_rows, 1), 0)
    for j in range(max(tile_rows - 1, 0).bit_length()):
        shift = (length - (1 << j)) % length             # == -2**j  (mod L)
        if shift == 0:
            continue
        g = jnp.where((row & (1 << j)) != 0, roll_cols(g, shift), g)

    # Partial circulant-diagonal sums for this strip: [1, L] f32.
    partial = jnp.sum(g, axis=0, keepdims=True)

    # Account for the strip base: out[c] += partial[(c + base) % L].
    # base = r * tile_rows is a scalar, so this is a roll of a single [1, L]
    # row (scalar-conditioned static rolls; negligible cost).
    if num_row_tiles > 1:
        base = r * tile_rows
        shift_total = (length - base) % length
        for j in range((length - 1).bit_length()):
            s = 1 << j
            partial = jnp.where((shift_total & s) != 0,
                                jnp.roll(partial, s, axis=1), partial)

    @pl.when(r == 0)
    def _():
        out_ref[...] = jnp.zeros_like(out_ref)
    out_ref[...] += partial                              # resident accumulator


def corr_mean(q3, k3):
    """q3, k3: [B, L, HE] (ideally bf16) -> [B, 1, L] f32 diagonal sums."""
    b, length, he = q3.shape
    tile_rows = _choose_row_tile(length)
    num_row_tiles = length // tile_rows
    # pltpu.roll needs a (8,128)-aligned operand; fall back to jnp.roll
    # (slice+concat, still correct) for small / odd lengths.
    use_xlu_roll = (length % 128 == 0) and (tile_rows % 8 == 0)
    kernel = partial(_corr_mean_kernel, length=length, tile_rows=tile_rows,
                     num_row_tiles=num_row_tiles, use_xlu_roll=use_xlu_roll)
    return pl.pallas_call(
        kernel,
        out_shape=jax.ShapeDtypeStruct((b, 1, length), jnp.float32),
        grid_spec=pltpu.PrefetchScalarGridSpec(
            num_scalar_prefetch=0,
            grid=(b, num_row_tiles),
            in_specs=[pl.BlockSpec((None, tile_rows, he), lambda i, r: (i, r, 0)),
                      pl.BlockSpec((None, length, he), lambda i, r: (i, 0, 0))],
            out_specs=pl.BlockSpec((None, 1, length), lambda i, r: (i, 0, 0)),
        ),
        compiler_params=pltpu.CompilerParams(
            dimension_semantics=("parallel", "arbitrary")),
    )(q3, k3)


# ----------------------------------------------------------------------------
# Kernel 2: time-delay aggregation (training path: global top-k delays)
#   out[b] = sum_i roll(values[b], -index[i], time) * softmax_weight[b, i]
# ----------------------------------------------------------------------------
def _agg_kernel(idx_ref, w_ref, v_ref, out_ref, vbuf_ref, *, length, top_k):
    b = pl.program_id(0)
    v = v_ref[...]                                       # [L, c_tile]
    # Time-doubled copy in VMEM: roll-by-delay becomes one dynamic sublane slice.
    vbuf_ref[0:length, :] = v
    vbuf_ref[length:2 * length, :] = v
    # TODO(synk): only the first max(delay) wrap rows of the second half are
    # ever read; a chunked pl.when-guarded copy would cut this VMEM traffic.
    acc = None
    for i in range(top_k):                               # static, ~log(L) terms
        d = idx_ref[i]                                   # delay   (SMEM scalar)
        w = w_ref[b * top_k + i]                         # weight  (SMEM scalar)
        term = vbuf_ref[pl.ds(d, length), :].astype(jnp.float32) * w
        acc = term if acc is None else acc + term
    out_ref[...] = acc                                   # single fused store


def time_delay_agg(v3, index, weights_flat, top_k):
    b, length, chan = v3.shape
    c_tile = _choose_chan_tile(chan)
    num_c_tiles = chan // c_tile
    return pl.pallas_call(
        partial(_agg_kernel, length=length, top_k=top_k),
        out_shape=jax.ShapeDtypeStruct((b, length, chan), jnp.float32),
        grid_spec=pltpu.PrefetchScalarGridSpec(
            num_scalar_prefetch=2,                       # index, weights -> SMEM
            grid=(b, num_c_tiles),
            in_specs=[pl.BlockSpec((None, length, c_tile),
                                   lambda i, c, idx, w: (i, 0, c))],
            out_specs=pl.BlockSpec((None, length, c_tile),
                                   lambda i, c, idx, w: (i, 0, c)),
            scratch_shapes=[pltpu.VMEM((2 * length, c_tile), v3.dtype)],
        ),
        compiler_params=pltpu.CompilerParams(
            dimension_semantics=("parallel", "parallel")),
    )(index, weights_flat, v3)


# ----------------------------------------------------------------------------
# Forward wrapper (glue: reshapes, top-k selection, softmax over top_k weights)
# ----------------------------------------------------------------------------
def auto_correlation_forward(queries, keys, values, attn_mask=None, factor=1):
    del attn_mask  # unused by the reference forward
    B, L, H, E = queries.shape
    _, S, _, D = values.shape

    if L > S:
        values = jnp.concatenate(
            [values, jnp.zeros((B, L - S, H, D), values.dtype)], axis=1)
        keys = jnp.concatenate(
            [keys, jnp.zeros((B, L - S, H, E), keys.dtype)], axis=1)
    else:
        values = values[:, :L]
        keys = keys[:, :L]

    # ---- period-based dependency discovery (Pallas kernel 1, MXU) ----
    # bf16 MXU inputs (f32 accumulation inside the kernel): halves q/k DMA and
    # uses the native MXU datapath.  H, E are already trailing -> pure reshape.
    q3 = queries.reshape(B, L, H * E).astype(jnp.bfloat16)
    k3 = keys.reshape(B, L, H * E).astype(jnp.bfloat16)
    d_sum = corr_mean(q3, k3).reshape(B, L)              # column c == delay (-c) mod L
    mean_value = jnp.concatenate([d_sum[:, :1], d_sum[:, :0:-1]],
                                 axis=1) / (H * E)       # [B, L] == mean_{h,e} corr

    # ---- training-mode delay selection (tiny; plain JAX glue) ----
    top_k = int(factor * math.log(L))
    if top_k <= 0:
        # PyTorch: empty top-k loop -> zero output.
        return jnp.zeros((B, L, H, D), jnp.float32), None
    _, index = jax.lax.top_k(jnp.mean(mean_value, axis=0), top_k)   # [top_k]
    weights = jnp.take(mean_value, index, axis=1)                   # [B, top_k]
    tmp_corr = jax.nn.softmax(weights, axis=-1).astype(jnp.float32)

    # ---- time-delay aggregation (Pallas kernel 2) ----
    v3 = values.reshape(B, L, H * D)                     # [B, L, R], no doubling in HBM
    agg = time_delay_agg(v3, index.astype(jnp.int32),
                         tmp_corr.reshape(-1), top_k)    # [B, L, R] f32
    V = agg.reshape(B, L, H, D)                          # matches permute(0,3,1,2)
    return V, None


# ----------------------------------------------------------------------------
# Pure-JAX reference (mirrors the PyTorch training-mode forward, using FFT)
# ----------------------------------------------------------------------------
def reference_forward(queries, keys, values, factor=1):
    B, L, H, E = queries.shape
    _, S, _, D = values.shape
    if L > S:
        values = jnp.concatenate(
            [values, jnp.zeros((B, L - S, H, D), values.dtype)], axis=1)
        keys = jnp.concatenate(
            [keys, jnp.zeros((B, L - S, H, E), keys.dtype)], axis=1)
    else:
        values = values[:, :L]
        keys = keys[:, :L]
    q_ = jnp.transpose(queries, (0, 2, 3, 1))
    k_ = jnp.transpose(keys, (0, 2, 3, 1))
    v_ = jnp.transpose(values, (0, 2, 3, 1))
    corr = jnp.fft.irfft(jnp.fft.rfft(q_, axis=-1) *
                         jnp.conj(jnp.fft.rfft(k_, axis=-1)), n=L, axis=-1)
    mean_value = jnp.mean(jnp.mean(corr, axis=1), axis=1)
    top_k = int(factor * math.log(L))
    index = jax.lax.top_k(jnp.mean(mean_value, axis=0), top_k)[1]
    weights = jnp.take(mean_value, index, axis=1)
    tmp_corr = jax.nn.softmax(weights, axis=-1)
    agg = jnp.zeros_like(v_, dtype=jnp.float32)
    for i in range(top_k):
        pattern = jnp.roll(v_, -int(index[i]), axis=-1)
        agg = agg + pattern * tmp_corr[:, i][:, None, None, None]
    return jnp.transpose(agg, (0, 3, 1, 2))


if __name__ == "__main__":
    def run_case(B, L, S, H, E, D, factor, seed, rtol=1e-2, atol=1e-2):
        kq, kn, kv = jax.random.split(jax.random.PRNGKey(seed), 3)
        queries = jax.random.normal(kq, (B, L, H, E), dtype=jnp.float32)
        noise = jax.random.normal(kn, (B, S, H, E), dtype=jnp.float32)
        # Plant two dominant periods so the selected top-k delay set is well
        # separated from the noise floor (robust to bf16 matmul inputs) while
        # keeping the softmax weights genuinely spread at small L.
        keys = (0.8 * jnp.roll(queries[:, :S], 3, axis=1)
                + 0.7 * jnp.roll(queries[:, :S], 7, axis=1)
                + 0.1 * noise)
        values = jax.random.normal(kv, (B, S, H, D), dtype=jnp.float32)

        V, attn = auto_correlation_forward(queries, keys, values,
                                           attn_mask=None, factor=factor)
        V = jax.block_until_ready(V)
        assert V.shape == (B, L, H, D) and attn is None

        V_ref = jax.block_until_ready(
            reference_forward(queries, keys, values, factor=factor))
        # Tolerance reflects bf16 matmul inputs (f32 accumulation) vs f32 FFT.
        np.testing.assert_allclose(np.asarray(V), np.asarray(V_ref),
                                   rtol=rtol, atol=atol)

    # Small case (unaligned L -> jnp.roll fallback, single row tile).
    run_case(B=2, L=16, S=16, H=4, E=8, D=8, factor=1, seed=0)
    # Larger case (L % 128 == 0 -> XLU pltpu.roll path, 2 row tiles, top_k=6).
    run_case(B=2, L=512, S=512, H=2, E=16, D=16, factor=1, seed=1)
    print("KERNEL_OK")
</pallas_src>

<mosaic_0001>
module attributes {stable_mosaic.version = 11 : i64} {
  func.func @_corr_mean_kernel(%arg0: i32, %arg1: i32, %arg2: memref<1x16x32xbf16, #tpu.memory_space<vmem>>, %arg3: memref<1x16x32xbf16, #tpu.memory_space<vmem>>, %arg4: memref<1x1x16xf32, #tpu.memory_space<vmem>>) attributes {dimension_semantics = [#tpu.dimension_semantics<parallel>, #tpu.dimension_semantics<arbitrary>], iteration_bounds = array<i64: 2, 1>, scalar_prefetch = 0 : i64, scratch_operands = 0 : i64, tpu.core_type = #tpu.core_type<tc>, window_params = [{transform_indices = @transform_0, window_bounds = array<i64: 1, 16, 32>}, {transform_indices = @transform_1, window_bounds = array<i64: 1, 16, 32>}, {transform_indices = @transform_2, window_bounds = array<i64: 1, 1, 16>}]} {
    %c0 = arith.constant 0 : index
    %c0_0 = arith.constant 0 : index
    %c0_1 = arith.constant 0 : index
    %0 = vector.load %arg2[%c0, %c0_0, %c0_1] : memref<1x16x32xbf16, #tpu.memory_space<vmem>>, vector<1x16x32xbf16>
    %1 = vector.shape_cast %0 : vector<1x16x32xbf16> to vector<16x32xbf16>
    %c0_2 = arith.constant 0 : index
    %c0_3 = arith.constant 0 : index
    %c0_4 = arith.constant 0 : index
    %2 = vector.load %arg3[%c0_2, %c0_3, %c0_4] : memref<1x16x32xbf16, #tpu.memory_space<vmem>>, vector<1x16x32xbf16>
    %3 = vector.shape_cast %2 : vector<1x16x32xbf16> to vector<16x32xbf16>
    %cst = arith.constant dense<0.000000e+00> : vector<16x16xf32>
    %4 = tpu.matmul %1, %3, %cst {dimension_numbers = #tpu.dot_dimension_numbers<[1], [1], [0], [0], [0, 0, 1, 0], [], []>} : vector<16x32xbf16>, vector<16x32xbf16>, vector<16x16xf32> -> vector<16x16xf32>
    %5 = tpu.iota {dimensions = array<i32: 0>} : vector<16x1xi32>
    %c1_i32 = arith.constant 1 : i32
    %6 = vector.broadcast %c1_i32 : i32 to vector<16x1xi32>
    %7 = arith.andi %5, %6 : vector<16x1xi32>
    %c0_i32 = arith.constant 0 : i32
    %8 = vector.broadcast %c0_i32 : i32 to vector<16x1xi32>
    %9 = arith.cmpi ne, %7, %8 : vector<16x1xi32>
    %10 = vector.extract_strided_slice %4 {offsets = [0, 1], sizes = [16, 15], strides = [1, 1]} : vector<16x16xf32> to vector<16x15xf32>
    %11 = vector.extract_strided_slice %4 {offsets = [0, 0], sizes = [16, 1], strides = [1, 1]} : vector<16x16xf32> to vector<16x1xf32>
    %12 = tpu.concatenate %10, %11 in 1 : vector<16x15xf32>, vector<16x1xf32> -> vector<16x16xf32>
    %13 = vector.shape_cast %9 : vector<16x1xi1> to vector<16x1xi1>
    %14 = vector.broadcast %13 : vector<16x1xi1> to vector<16x16xi1>
    %15 = arith.select %14, %12, %4 : vector<16x16xi1>, vector<16x16xf32>
    %c2_i32 = arith.constant 2 : i32
    %16 = vector.broadcast %c2_i32 : i32 to vector<16x1xi32>
    %17 = arith.andi %5, %16 : vector<16x1xi32>
    %c0_i32_5 = arith.constant 0 : i32
    %18 = vector.broadcast %c0_i32_5 : i32 to vector<16x1xi32>
    %19 = arith.cmpi ne, %17, %18 : vector<16x1xi32>
    %20 = vector.extract_strided_slice %15 {offsets = [0, 2], sizes = [16, 14], strides = [1, 1]} : vector<16x16xf32> to vector<16x14xf32>
    %21 = vector.extract_strided_slice %15 {offsets = [0, 0], sizes = [16, 2], strides = [1, 1]} : vector<16x16xf32> to vector<16x2xf32>
    %22 = tpu.concatenate %20, %21 in 1 : vector<16x14xf32>, vector<16x2xf32> -> vector<16x16xf32>
    %23 = vector.shape_cast %19 : vector<16x1xi1> to vector<16x1xi1>
    %24 = vector.broadcast %23 : vector<16x1xi1> to vector<16x16xi1>
    %25 = arith.select %24, %22, %15 : vector<16x16xi1>, vector<16x16xf32>
    %c4_i32 = arith.constant 4 : i32
    %26 = vector.broadcast %c4_i32 : i32 to vector<16x1xi32>
    %27 = arith.andi %5, %26 : vector<16x1xi32>
    %c0_i32_6 = arith.constant 0 : i32
    %28 = vector.broadcast %c0_i32_6 : i32 to vector<16x1xi32>
    %29 = arith.cmpi ne, %27, %28 : vector<16x1xi32>
    %30 = vector.extract_strided_slice %25 {offsets = [0, 4], sizes = [16, 12], strides = [1, 1]} : vector<16x16xf32> to vector<16x12xf32>
    %31 = vector.extract_strided_slice %25 {offsets = [0, 0], sizes = [16, 4], strides = [1, 1]} : vector<16x16xf32> to vector<16x4xf32>
    %32 = tpu.concatenate %30, %31 in 1 : vector<16x12xf32>, vector<16x4xf32> -> vector<16x16xf32>
    %33 = vector.shape_cast %29 : vector<16x1xi1> to vector<16x1xi1>
    %34 = vector.broadcast %33 : vector<16x1xi1> to vector<16x16xi1>
    %35 = arith.select %34, %32, %25 : vector<16x16xi1>, vector<16x16xf32>
    %c8_i32 = arith.constant 8 : i32
    %36 = vector.broadcast %c8_i32 : i32 to vector<16x1xi32>
    %37 = arith.andi %5, %36 : vector<16x1xi32>
    %c0_i32_7 = arith.constant 0 : i32
    %38 = vector.broadcast %c0_i32_7 : i32 to vector<16x1xi32>
    %39 = arith.cmpi ne, %37, %38 : vector<16x1xi32>
    %40 = vector.extract_strided_slice %35 {offsets = [0, 8], sizes = [16, 8], strides = [1, 1]} : vector<16x16xf32> to vector<16x8xf32>
    %41 = vector.extract_strided_slice %35 {offsets = [0, 0], sizes = [16, 8], strides = [1, 1]} : vector<16x16xf32> to vector<16x8xf32>
    %42 = tpu.concatenate %40, %41 in 1 : vector<16x8xf32>, vector<16x8xf32> -> vector<16x16xf32>
    %43 = vector.shape_cast %39 : vector<16x1xi1> to vector<16x1xi1>
    %44 = vector.broadcast %43 : vector<16x1xi1> to vector<16x16xi1>
    %45 = arith.select %44, %42, %35 : vector<16x16xi1>, vector<16x16xf32>
    %cst_8 = arith.constant dense<0.000000e+00> : vector<16xf32>
    %46 = vector.multi_reduction <add>, %45, %cst_8 [0] : vector<16x16xf32> to vector<16xf32>
    %47 = vector.shape_cast %46 : vector<16xf32> to vector<1x16xf32>
    %c0_i32_9 = arith.constant 0 : i32
    %48 = arith.cmpi eq, %arg1, %c0_i32_9 : i32
    %49 = arith.extui %48 : i1 to i32
    %c0_i32_10 = arith.constant 0 : i32
    %50 = arith.cmpi ne, %49, %c0_i32_10 : i32
    scf.if %50 {
      %cst_17 = arith.constant 0.000000e+00 : f32
      %57 = vector.broadcast %cst_17 : f32 to vector<1x16xf32>
      %c0_18 = arith.constant 0 : index
      %c0_19 = arith.constant 0 : index
      %c0_20 = arith.constant 0 : index
      %58 = vector.load %arg4[%c0_18, %c0_19, %c0_20] : memref<1x1x16xf32, #tpu.memory_space<vmem>>, vector<1x1x16xf32>
      %59 = vector.shape_cast %58 : vector<1x1x16xf32> to vector<1x16xf32>
      %60 = vector.shape_cast %57 : vector<1x16xf32> to vector<1x1x16xf32>
      tpu.vector_store %arg4[%c0_18, %c0_19, %c0_20], %60 {strides = array<i32>} : memref<1x1x16xf32, #tpu.memory_space<vmem>>, vector<1x1x16xf32>,
    } else {
    }
    %c0_11 = arith.constant 0 : index
    %c0_12 = arith.constant 0 : index
    %c0_13 = arith.constant 0 : index
    %51 = vector.load %arg4[%c0_11, %c0_12, %c0_13] : memref<1x1x16xf32, #tpu.memory_space<vmem>>, vector<1x1x16xf32>
    %52 = vector.shape_cast %51 : vector<1x1x16xf32> to vector<1x16xf32>
    %53 = arith.addf %52, %47 : vector<1x16xf32>
    %c0_14 = arith.constant 0 : index
    %c0_15 = arith.constant 0 : index
    %c0_16 = arith.constant 0 : index
    %54 = vector.load %arg4[%c0_14, %c0_15, %c0_16] : memref<1x1x16xf32, #tpu.memory_space<vmem>>, vector<1x1x16xf32>
    %55 = vector.shape_cast %54 : vector<1x1x16xf32> to vector<1x16xf32>
    %56 = vector.shape_cast %53 : vector<1x16xf32> to vector<1x1x16xf32>
    tpu.vector_store %arg4[%c0_14, %c0_15, %c0_16], %56 {strides = array<i32>} : memref<1x1x16xf32, #tpu.memory_space<vmem>>, vector<1x1x16xf32>,
    return
  }
  func.func @transform_0(%arg0: i32, %arg1: i32) -> (i32, i32, i32) {
    %c0_i32 = arith.constant 0 : i32
    %c0_i32_0 = arith.constant 0 : i32
    return %arg0, %arg1, %c0_i32 : i32, i32, i32
  }
  func.func @transform_1(%arg0: i32, %arg1: i32) -> (i32, i32, i32) {
    %c0_i32 = arith.constant 0 : i32
    %c0_i32_0 = arith.constant 0 : i32
    %c0_i32_1 = arith.constant 0 : i32
    return %arg0, %c0_i32, %c0_i32_0 : i32, i32, i32
  }
  func.func @transform_2(%arg0: i32, %arg1: i32) -> (i32, i32, i32) {
    %c0_i32 = arith.constant 0 : i32
    %c0_i32_0 = arith.constant 0 : i32
    %c0_i32_1 = arith.constant 0 : i32
    return %arg0, %c0_i32, %c0_i32_0 : i32, i32, i32
  }
}

</mosaic_0001>

<bundles_post_ra>
// kernel: tpu_custom_call.1
= control target key start
LH: loop header
LB: loop body
LE: loop exit
PB: predicated region body
PF: predicated region fallthrough
CT: control target
= control target key end

     0   :  { %7 = vsyncpa [#allocation3], 0  ;;  %s1056_s0 = inlined_call_operand.hbm [shape: bf16[2,16,32], index: 0, kind: input, shape index: {}]   ;;  %s1057_s1 = inlined_call_operand.hbm [shape: bf16[2,16,32], index: 1, kind: input, shape index: {}]   ;;  %s1058_s2 = inlined_call_operand.hbm [shape: f32[2,1,16], index: 2, kind: output, shape index: {}]  }
   0x1   :  { %9 = vsyncpa [#allocation3 + $0x1], 0 }
   0x2   :  { %10 = vsyncpa [#allocation6], 0 }
   0x3   :  { %12 = vsyncpa [#allocation6 + $0x1], 0 }
   0x4   :  { %13 = vsyncpa [#allocation4], 0 }
   0x5   :  { %15 = vsyncpa [#allocation4 + $0x1], 0  ;;  %s813_s9 = smov 0   ;;  %s815_s10 = smov 0  }
   0x6   :  { %s817_s11 = smov 0   ;;  %s819_s12 = smov 0  }
   0x7   :  { %s821_s13 = smov 0   ;;  %s823_s14 = smov 0  }
   0x8 LB: > { %s525_s15 = sadd.s32 4294967295, %s781_s14   ;;  %s526_s16 = sadd.s32 4294967294, %s781_s14   ;;  %s781_s14 = sphi %s823_s14, %s21_s14   ;;  %s777_s13 = sphi %s821_s13, %s1076_s13   ;;  %s773_s12 = sphi %s819_s12, %s1075_s12   ;;  %s769_s11 = sphi %s817_s11, %s1074_s11   ;;  %s765_s10 = sphi %s815_s10, %s1073_s10   ;;  %s761_s9 = sphi %s813_s9, %s1072_s9  }
   0x9   : > { %s33_s17 = sadd.s32 1, %s777_s13  ;;  %s42_s18 = sadd.s32 1, %s769_s11 }
   0xa   : > { %p35_p0 = scmp.ge.s32.totalorder %s33_s17, 2  ;;  %p49_p1 = scmp.ne.s32.totalorder %s769_s11, %s765_s10 }
   0xb   : > { %p50_p2 = scmp.eq.s32.totalorder %s781_s14, 0  ;;  %p55_p3 = scmp.ne.s32.totalorder %s765_s10, %s761_s9 }
   0xc   : > { %s1078_s17 = smov (%p35_p0, %s33_s17), 0  ;;  %p56_p5 = scmp.eq.s32.totalorder %s525_s15, 0 }
   0xd   : > { %p854_p4 = por %p50_p2, %p49_p1  ;;  %s37_s20 = ssub.s32 %s777_s13, %s1078_s17 }
   0xe   : > { %p105_p6 = scmp.eq.s32.totalorder %s525_s15, 1  ;;  %p40_p7 = scmp.eq.s32.totalorder %s37_s20, 0 }
   0xf   : > { %p860_p8 = por %p56_p5, %p55_p3  ;;  %p111_p10 = scmp.eq.s32.totalorder %s526_s16, 1 }
  0x10   : > { %p864_p9 = por %p105_p6, %p49_p1  ;;  %p571_p13 = scmp.lt.s32.totalorder %s781_s14, 2 }
  0x11   : > { %s1062_s21 = scalar_select %p860_p8, 1, 0 }
  0x12   : > { %s1063_s22 = scalar_select %p864_p9, 1, 0 }
  0x13   : > { %s869_s23 = scalar_select %p40_p7, %s769_s11, %s42_s18  }
  0x14   : > { %p871_p11 = por %p111_p10, %p55_p3  ;;  %s878_s25 = sand.u32 1, %s769_s11  }
  0x15   : > { %s529_s26 = sshll.u32 %s878_s25, 3  ;;  %s544_s27 = sshll.u32 %s777_s13, 7 }
  0x16   : > { %s1064_s24 = scalar_select %p871_p11, 1, 0 }
  0x17   : > { %s887_s30 = scalar_lea.hbm %s1056_s0, %s544_s27  ;;  %s135_s3 = scalar_lea.vmem [#allocation2], %s529_s26 }
  0x18   : > { %s144_s4 = sshll.u32 %s135_s3, 4  ;;  %p895_p0 = pnand %p571_p13, %p854_p4  ;;  %s891_s4 = int_to_ptr.vmem [resolvable:$true] %s144_s4 }
  0x19   : > { %s132_s6 = scalar_lea.sflag [#allocation3], %s878_s25  ;;  %s635_s7 = scalar_lea.hbm %s887_s30, 128 }
  0x1a   : > { %p636_p2 = scmp.ne.s32.totalorder %s887_s30, %s635_s7  ;;  %p637_p3 = pneg %p895_p0 }
  0x1b   : > { %s640_s16 = scalar_lea.hbm %s1056_s0, 256  ;;  %p641_p4 = scmp.lt.u32.totalorder %s887_s30, %s1056_s0 }
  0x1c   : > { %p638_p5 = pnand %p637_p3, %p636_p2  ;;  %p642_p7 = scmp.lt.u32.totalorder %s640_s16, %s635_s7 }
  0x1d   : > { %p644_p13 = scmp.lt.u32.totalorder %s635_s7, %s887_s30 }
  0x1e   : > { %p639_p6 = pneg %p638_p5  ;;  %p643_p10 = por %p642_p7, %p641_p4 }
  0x20   : > { %p645_p12 = por %p644_p13, %p643_p10 }
  0x22   : > { %p646_p1 = pnand %p645_p12, %p639_p6 }
  0x24   : > { %649 = shalt.err (!%p646_p1)
}
  0x25   : > { %s650_s20 = scalar_lea.vmem %s891_s4, 128  ;;  %s783_s28 = smov [#allocation2]  }
  0x26   : > { %p651_p2 = scmp.ne.s32.totalorder %s891_s4, %s650_s20  ;;  %s655_s29 = sshll.u32 %s783_s28, 4  ;;  %s656_s29 = int_to_ptr.vmem [resolvable:$false] %s655_s29 }
  0x27   : > { %s657_s3 = scalar_lea.vmem %s656_s29, 256  ;;  %p658_p9 = scmp.lt.s32.totalorder %s891_s4, %s656_s29 }
  0x28   : > { %p653_p5 = pnand %p651_p2, %p637_p3  ;;  %p659_p4 = scmp.lt.s32.totalorder %s657_s3, %s650_s20 }
  0x2a   : > { %p654_p11 = pneg %p653_p5  ;;  %p660_p7 = por %p659_p4, %p658_p9 }
  0x2c   : > { %p661_p10 = pnand %p660_p7, %p654_p11 }
  0x2e   : > { %664 = shalt.err (!%p661_p10)
}
  0x2f   : > { %s784_s7 = smov 64   ;;  %s785_s8 = smov 4  }
  0x30   : > { %563 = dma.hbm_to_vmem [thread:$0]  (!%p895_p0), %s887_s30, 128, %s891_s4, %s132_s6, %s784_s7, %s784_s7, %s785_s8  }
  0x31   : > { %p173_p9 = scmp.lt.s32.totalorder %s781_s14, 3  ;;  %s937_s18 = scalar_lea.hbm %s1057_s1, %s544_s27 }
  0x32   : > { %p1066_p11 = scmp.ge.s32.totalorder %s781_s14, 1  ;;  %s158_s20 = scalar_lea.vmem [#allocation5], %s529_s26 }
  0x33   : > { %s165_s28 = sshll.u32 %s158_s20, 4  ;;  %s155_s30 = scalar_lea.sflag [#allocation6], %s878_s25  ;;  %s947_s28 = int_to_ptr.vmem [resolvable:$true] %s165_s28 }
  0x34   : > { %p941_p12 = pnand %p1066_p11, %p173_p9  ;;  %s665_s4 = scalar_lea.hbm %s937_s18, 128 }
  0x35   : > { %p666_p1 = scmp.ne.s32.totalorder %s937_s18, %s665_s4  ;;  %s670_s29 = scalar_lea.hbm %s1057_s1, 256 }
  0x36   : > { %p671_p2 = scmp.lt.u32.totalorder %s937_s18, %s1057_s1  ;;  %p672_p5 = scmp.lt.u32.totalorder %s670_s29, %s665_s4 }
  0x37   : > { %p668_p6 = pnand %p666_p1, %p637_p3  ;;  %p674_p7 = scmp.lt.u32.totalorder %s665_s4, %s937_s18 }
  0x38   : > { %p673_p4 = por %p672_p5, %p671_p2 }
  0x39   : > { %p669_p13 = pneg %p668_p6 }
  0x3a   : > { %p675_p10 = por %p674_p7, %p673_p4 }
  0x3c   : > { %p676_p9 = pnand %p675_p10, %p669_p13 }
  0x3e   : > { %679 = shalt.err (!%p676_p9)
}
  0x3f   : > { %s680_s26 = scalar_lea.vmem %s947_s28, 128  ;;  %s786_s16 = smov [#allocation5]  }
  0x40   : > { %p681_p11 = scmp.ne.s32.totalorder %s947_s28, %s680_s26  ;;  %s685_s20 = sshll.u32 %s786_s16, 4  ;;  %s686_s20 = int_to_ptr.vmem [resolvable:$false] %s685_s20 }
  0x41   : > { %s687_s27 = scalar_lea.vmem %s686_s20, 256  ;;  %p688_p8 = scmp.lt.s32.totalorder %s947_s28, %s686_s20 }
  0x42   : > { %p683_p1 = pnand %p681_p11, %p637_p3  ;;  %p689_p2 = scmp.lt.s32.totalorder %s687_s27, %s680_s26 }
  0x44   : > { %p684_p6 = pneg %p683_p1  ;;  %p690_p5 = por %p689_p2, %p688_p8 }
  0x46   : > { %p691_p4 = pnand %p690_p5, %p684_p6 }
  0x48   : > { %694 = shalt.err (!%p691_p4)
}
  0x49   : > { %566 = dma.hbm_to_vmem [thread:$0]  (!%p895_p0), %s937_s18, 128, %s947_s28, %s155_s30, %s784_s7, %s784_s7, %s785_s8  }
  0x4a   : > { %177 = sbr.rel (%p941_p12) target bundleno = 810 (0x32a), region = 28  ;;  %s981_s4 = sand.u32 (!%p941_p12), 1, %s765_s10  }
  0x4b   : > { %s536_s6 = sshll.u32 (!%p941_p12), %s981_s4, 3  ;;  %s180_s29 = scalar_lea.sflag (!%p941_p12), [#allocation3], %s981_s4 }
  0x4c   : > { %s183_s5 = scalar_lea.vmem (!%p941_p12), [#allocation2], %s536_s6  ;;  %p1068_p8 = scmp.ne.s32.totalorder (!%p941_p12), %s1062_s21, 0 }
  0x51   : > { %748 = dma.done.wait (%p1068_p8), %s180_s29, 128  }
  0x52   : > { %750 = vsyncadd (%p1068_p8), %s180_s29, 4294967168  ;;  %s189_s25 = scalar_lea.sflag [#allocation6], %s981_s4  ;;  %s192_s7 = scalar_lea.vmem [#allocation5], %s536_s6 }
  0x53   : > { %752 = dma.done.wait (%p1068_p8), %s189_s25, 128  }
  0x54   : > { %754 = vsyncadd (%p1068_p8), %s189_s25, 4294967168  ;;  %vm406_vm0 = vcmask 122880   ;;  %v787_v0 = vmov 0.0   ;;  %s995_s8 = scalar_lea.vmem [#allocation7], %s981_s4  ;;  %vm788_vm1 = vmmov 0   ;;  %vm233_vm2 = vcmask 261120  }
  0x55   : > { %548 = vmatprep.subr.bf16.mxu0 %v787_v0  ;;  %407 = vst.msk [vmem:[%s995_s8] sm:$0x1] %vm406_vm0, %v787_v0  ;;  %550 = vmatprep.mubr.msk.bf16.mxu0 %vm788_vm1, %v787_v0  ;;  %v633_v1 = vld [vmem:[%s192_s7] sm:$0xff]   ;;  %v634_v3 = vld [vmem:[%s183_s5] sm:$0xff]   ;;  %s789_s21 = smov 127   ;;  %s790_s18 = smov 15   ;;  %v281_v8 = vlaneseq }
  0x56   : > { %v238_v2 = vsel %vm233_vm2, %v633_v1, 0  ;;  %vm302_vm4 = vcmask 121856   ;;  %s791_s19 = smov 14   ;;  %s792_s28 = smov 126   ;;  %vm329_vm6 = vcmask 113664   ;;  %vm356_vm9 = vcmask 97280  }
  0x57   : > { %549 = vmatpush3.bf16.xpose.msra.mxu0 %v238_v2  ;;  %v282_v9 = vshrl.u32 %v281_v8, 7  ;;  %s793_s30 = smov 12   ;;  %s794_s3 = smov 124   ;;  %vm383_vm12 = vcmask 64512   ;;  %vm392_vm13 = vcmask 130048  }
  0x58   : > { %s795_s15 = smov 8   ;;  %s796_s26 = smov 120  }
  0x59   : > { %v283_v10 = vadd.s32 8, %v282_v9  ;;  %v284_v14 = vand.u32 1, %v282_v9  ;;  %v311_v22 = vand.u32 2, %v282_v9  ;;  %v338_v36 = vand.u32 4, %v282_v9  ;;  %s541_s16 = sshll.u32 %s773_s12, 4  ;;  %s425_s20 = sshll.u32 %s995_s8, 4  ;;  %s1007_s20 = int_to_ptr.vmem [resolvable:$true] %s425_s20 }
  0x5a   : > { %s1005_s29 = scalar_lea.hbm %s1058_s2, %s541_s16  ;;  %s413_s5 = scalar_lea.sflag [#allocation4], %s981_s4 }
  0x5b   : > { %v285_v12 = vand.u32 1, %v283_v10  ;;  %vm286_vm5 = vcmp.ne.s32.totalorder %v284_v14, 0  ;;  %v312_v21 = vand.u32 2, %v283_v10  ;;  %vm313_vm8 = vcmp.ne.s32.totalorder %v311_v22, 0  ;;  %s695_s25 = scalar_lea.vmem %s1007_s20, 16  ;;  %p1069_p3 = scmp.ne.s32.totalorder %s1063_s22, 0 }
  0x5c   : > { %v339_v31 = vand.u32 4, %v283_v10  ;;  %vm340_vm11 = vcmp.ne.s32.totalorder %v338_v36, 0  ;;  %v408_v52 = vld [vmem:[%s995_s8] sm:$0x1]  ;;  %p696_p0 = scmp.ne.s32.totalorder %s1007_s20, %s695_s25  ;;  %s797_s12 = smov [#allocation7]  }
  0x5d   : > { %vm287_vm3 = vcmp.ne.s32.totalorder %v285_v12, 0  ;;  %vm314_vm7 = vcmp.ne.s32.totalorder %v312_v21, 0  ;;  %s699_s7 = sshll.u32 %s797_s12, 4  ;;  %s700_s7 = int_to_ptr.vmem [resolvable:$false] %s699_s7 }
  0x5e   : > { %551 = vmatmul.mubr.msk.bf16.vlgmr.msra.gmra.mrb[0].mxu0 %vm233_vm2, %v634_v3  ;;  %vm341_vm10 = vcmp.ne.s32.totalorder %v339_v31, 0  ;;  %p697_p12 = pnand %p696_p0, %p1069_p3  ;;  %p702_p7 = scmp.lt.s32.totalorder %s1007_s20, %s700_s7 }
  0x60   : > { %p698_p13 = pneg %p697_p12 }
 0x131   : > { %v274_v4 = vpop.f32.mrb[0].mxu0 }
 0x132   : > { %290 = vrot.lane.b32.xlu1 %v274_v4, %s789_s21  ;;  %v552_v5 = vpop.f32.mrb[1].mxu0 }
 0x133   : > { %v277_v6 = vpop.f32.mrb[2].mxu0 }
 0x134   : > { %292 = vrot.lane.b32.xlu0 %v277_v6, %s789_s21  ;;  %v553_v7 = vpop.f32.mrb[3].mxu0  ;;  %s701_s21 = scalar_lea.vmem %s700_s7, 32 }
 0x135   : > { %p703_p10 = scmp.lt.s32.totalorder %s701_s21, %s695_s25 }
 0x136   : > { %296 = vrot.lane.b32.xlu1 %v274_v4, %s790_s18 }
 0x137   : > { %p704_p9 = por %p703_p10, %p702_p7 }
 0x138   : > { %298 = vrot.lane.b32.xlu0 %v277_v6, %s790_s18 }
 0x139   : > { %p705_p11 = pnand %p704_p9, %p698_p13 }
 0x1a4   : > { %v291_v11 = vpop.permute.xlu1 %290 }
 0x1a6   : > { %v293_v13 = vpop.permute.xlu0 %292 }
 0x1a8   : > { %v297_v15 = vpop.permute.xlu1 %296 }
 0x1a9   : > { %v303_v19 = vsel %vm302_vm4, %v291_v11, %v297_v15 }
 0x1aa   : > { %v299_v16 = vpop.permute.xlu0 %298  ;;  %v309_v20 = vsel %vm286_vm5, %v303_v19, %v274_v4 }
 0x1ab   : > { %v304_v17 = vsel %vm302_vm4, %v293_v13, %v299_v16 }
 0x1ac   : > { %v310_v18 = vsel %vm287_vm3, %v304_v17, %v277_v6 }
 0x1ad   : > { %325 = vrot.lane.b32.xlu1 %v310_v18, %s791_s19  ;;  %319 = vrot.lane.b32.xlu0 %v310_v18, %s792_s28 }
 0x1b1   : > { %323 = vrot.lane.b32.xlu1 %v309_v20, %s791_s19  ;;  %317 = vrot.lane.b32.xlu0 %v309_v20, %s792_s28 }
 0x21f   : > { %v326_v23 = vpop.permute.xlu1 %325  ;;  %v320_v24 = vpop.permute.xlu0 %319 }
 0x220   : > { %v331_v25 = vsel %vm329_vm6, %v320_v24, %v326_v23 }
 0x221   : > { %v337_v26 = vsel %vm314_vm7, %v331_v25, %v310_v18 }
 0x222   : > { %352 = vrot.lane.b32.xlu1 %v337_v26, %s793_s30  ;;  %346 = vrot.lane.b32.xlu0 %v337_v26, %s794_s3 }
 0x223   : > { %v324_v27 = vpop.permute.xlu1 %323  ;;  %v318_v28 = vpop.permute.xlu0 %317 }
 0x224   : > { %v330_v29 = vsel %vm329_vm6, %v318_v28, %v324_v27 }
 0x225   : > { %v336_v30 = vsel %vm313_vm8, %v330_v29, %v309_v20 }
 0x226   : > { %350 = vrot.lane.b32.xlu1 %v336_v30, %s793_s30  ;;  %344 = vrot.lane.b32.xlu0 %v336_v30, %s794_s3 }
 0x294   : > { %v353_v32 = vpop.permute.xlu1 %352  ;;  %v347_v33 = vpop.permute.xlu0 %346 }
 0x295   : > { %v358_v34 = vsel %vm356_vm9, %v347_v33, %v353_v32 }
 0x296   : > { %v364_v35 = vsel %vm341_vm10, %v358_v34, %v337_v26 }
 0x297   : > { %379 = vrot.lane.b32.xlu1 %v364_v35, %s795_s15  ;;  %373 = vrot.lane.b32.xlu0 %v364_v35, %s796_s26 }
 0x298   : > { %v351_v37 = vpop.permute.xlu1 %350  ;;  %v345_v38 = vpop.permute.xlu0 %344 }
 0x299   : > { %v357_v39 = vsel %vm356_vm9, %v345_v38, %v351_v37 }
 0x29a   : > { %v363_v40 = vsel %vm340_vm11, %v357_v39, %v336_v30 }
 0x29b   : > { %v393_v44 = vsel %vm392_vm13, %v363_v40, 0.0 }
 0x309   : > { %v380_v41 = vpop.permute.xlu1 %379  ;;  %v374_v42 = vpop.permute.xlu0 %373 }
 0x30a   : > { %v385_v43 = vsel %vm383_vm12, %v374_v42, %v380_v41 }
 0x30b   : > { %v394_v45 = vsel %vm392_vm13, %v385_v43, 0.0 }
 0x30c   : > { %v395_v46 = vadd.f32 %v394_v45, %v393_v44 }
 0x30e   : > { %v396_v47 = vrot.slane %v395_v46, 4 }
 0x310   : > { %v397_v48 = vadd.f32 %v396_v47, %v395_v46 }
 0x312   : > { %v398_v49 = vrot.slane %v397_v48, 2 }
 0x314   : > { %v399_v50 = vadd.f32 %v398_v49, %v397_v48 }
 0x316   : > { %v400_v51 = vrot.slane %v399_v50, 1 }
 0x318   : > { %v401_v53 = vadd.f32 %v400_v51, %v399_v50 }
 0x31a   : > { %v409_v54 = vadd.f32 %v408_v52, %v401_v53 }
 0x31c   : > { %411 = vst.msk [vmem:[%s995_s8] sm:$0x1] %vm406_vm0, %v409_v54 }
 0x31d   : > { %708 = shalt.err (!%p705_p11)
}
 0x31e   : > { %s709_s4 = scalar_lea.hbm %s1005_s29, 16  ;;  %s713_s19 = scalar_lea.hbm %s1058_s2, 32 }
 0x31f   : > { %p710_p1 = scmp.ne.s32.totalorder %s1005_s29, %s709_s4  ;;  %p714_p5 = scmp.lt.u32.totalorder %s1005_s29, %s1058_s2 }
 0x320   : > { %p715_p4 = scmp.lt.u32.totalorder %s713_s19, %s709_s4  ;;  %p717_p0 = scmp.lt.u32.totalorder %s709_s4, %s1005_s29 }
 0x321   : > { %p711_p6 = pnand %p710_p1, %p1069_p3 }
 0x322   : > { %p716_p8 = por %p715_p4, %p714_p5 }
 0x323   : > { %p712_p2 = pneg %p711_p6 }
 0x324   : > { %p718_p12 = por %p717_p0, %p716_p8 }
 0x326   : > { %p719_p13 = pnand %p718_p12, %p712_p2 }
 0x328   : > { %722 = shalt.err (!%p719_p13)
}
 0x329   : > { %558 = dma.vmem_to_hbm [thread:$0]  (%p1069_p3), %s1007_s20, 16, %s1005_s29, %s413_s5  }
 0x32a PF: > { %s437_s3 = sand.u32 1, %s761_s9   ;;  %p1070_p7 = scmp.ne.s32.totalorder %s1064_s24, 0 }
 0x32b   : > { %p1071_p10 = scmp.ge.s32.totalorder %s781_s14, 2  ;;  %s438_s15 = scalar_lea.sflag [#allocation4], %s437_s3 }
 0x32d   : > { %p568_p9 = pnand %p1071_p10, %p1070_p7 }
 0x32f   : > { %756 = dma.done.wait (!%p568_p9), %s438_s15, 16  }
 0x330   : > { %758 = vsyncadd (!%p568_p9), %s438_s15, 4294967280  ;;  %s21_s14 = sadd.s32 1, %s781_s14   ;;  %s1072_s9 = smov %s765_s10 }
 0x331   : > { %p18_p11 = scmp.ge.s32.totalorder %s21_s14, 4   ;;  %s1073_s10 = smov %s769_s11 }
 0x332   : > { %s1074_s11 = smov %s869_s23  ;;  %s1075_s12 = smov %s777_s13 }
 0x333   : > { %s1076_s13 = smov %s1078_s17  ;;  %20 = sbr.rel (!%p18_p11) target bundleno = 8 (0x8), region = 90 }
 0x33a   :  { %442 = vsyncpa [#allocation3], 1 }
 0x33b   :  { %444 = vsyncpa [#allocation3 + $0x1], 1 }
 0x33c   :  { %445 = vsyncpa [#allocation6], 1 }
 0x33d   :  { %447 = vsyncpa [#allocation6 + $0x1], 1 }
 0x33e   :  { %448 = vsyncpa [#allocation4], 1 }
 0x33f   :  { %450 = vsyncpa [#allocation4 + $0x1], 1 }

</bundles_post_ra>
